<compile_context>
chip_gen: v7x
topology: tpu7x:2x2x1
jax: 0.10.0
libtpu: 0.0.40
codegen_flags: <defaults>
</compile_context>

<pallas_src>
import functools

import jax
import jax.numpy as jnp
from jax.experimental import pallas as pl
from jax.experimental.pallas import tpu as pltpu


# ----------------------- fused (LN) + matmul + bias (+GELU) (+residual) -----------------------

def _fused_mm_kernel(*refs, has_ln, activation, has_residual, eps):
    it = iter(refs)
    x_ref = next(it)
    g_ref = next(it) if has_ln else None
    bln_ref = next(it) if has_ln else None
    w_ref = next(it)
    b_ref = next(it)
    r_ref = next(it) if has_residual else None
    o_ref = next(it)

    if has_ln:
        x = x_ref[...].astype(jnp.float32)
        mean = jnp.mean(x, axis=-1, keepdims=True)
        xc = x - mean
        var = jnp.mean(xc * xc, axis=-1, keepdims=True)
        x = xc * jax.lax.rsqrt(var + eps) * g_ref[...] + bln_ref[...]
        xb = x.astype(jnp.bfloat16)
    else:
        xb = x_ref[...].astype(jnp.bfloat16)       # no-op if input already bf16

    # bf16 MXU matmul, fp32 accumulation.
    acc = jnp.dot(xb, w_ref[...], preferred_element_type=jnp.float32)
    acc = acc + b_ref[...]
    if activation == "gelu":
        acc = jax.nn.gelu(acc, approximate=False)   # exact erf GELU (matches nn.GELU)
    if has_residual:
        acc = acc + r_ref[...].astype(jnp.float32)
    o_ref[...] = acc.astype(o_ref.dtype)


def _pick_tm(M):
    if M <= 256:
        return M                      # equal-to-full-dim blocks are always legal
    for c in (256, 128, 64, 32, 16, 8):
        if M % c == 0:
            return c
    return M


def _pick_tn(N):
    for c in (512, 256, 128):
        if N % c == 0:
            return c
    return N


def fused_matmul(x, w, b, *, ln=None, residual=None, activation=None, eps=1e-6,
                 out_dtype=jnp.float32):
    """out = [optional LN(x)] @ w + b  [optional GELU]  [+ optional residual].

    x: [M, K] fp32/bf16, w: [K, N] bf16, b: [N] fp32, residual: [M, N] fp32.
    """
    M, K = x.shape
    K2, N = w.shape
    assert K == K2
    tm, tn = _pick_tm(M), _pick_tn(N)
    grid = (M // tm, N // tn)

    in_specs = [pl.BlockSpec((tm, K), lambda i, j: (i, 0))]   # row tile, resident over j
    args = [x]
    has_ln = ln is not None
    if has_ln:
        g, bln = ln
        in_specs += [pl.BlockSpec((1, K), lambda i, j: (0, 0)),
                     pl.BlockSpec((1, K), lambda i, j: (0, 0))]
        args += [g.reshape(1, K), bln.reshape(1, K)]
    in_specs += [pl.BlockSpec((K, tn), lambda i, j: (0, j)),  # streamed bf16 weight tile
                 pl.BlockSpec((1, tn), lambda i, j: (0, j))]
    args += [w, b.reshape(1, N)]
    has_res = residual is not None
    if has_res:
        in_specs += [pl.BlockSpec((tm, tn), lambda i, j: (i, j))]
        args += [residual]

    kernel = functools.partial(_fused_mm_kernel, has_ln=has_ln,
                               activation=activation, has_residual=has_res, eps=eps)
    return pl.pallas_call(
        kernel,
        out_shape=jax.ShapeDtypeStruct((M, N), out_dtype),
        grid=grid,
        in_specs=in_specs,
        out_specs=pl.BlockSpec((tm, tn), lambda i, j: (i, j)),
        compiler_params=pltpu.CompilerParams(
            dimension_semantics=("parallel", "parallel"),
            vmem_limit_bytes=32 * 1024 * 1024),
    )(*args)


# ----------------------------------- attention ------------------------------------------------

def _attention_kernel(q_ref, k_ref, v_ref, o_ref, *, num_heads, scale, n_real):
    # q/k/v refs: [Npad, D] slabs (all heads of one batch element), already biased.
    n_pad, D = q_ref.shape
    dh = D // num_heads

    # Mask padded key positions (>= n_real) so zero-pad tokens never receive weight.
    k_idx = jax.lax.broadcasted_iota(jnp.int32, (1, n_pad), 1)
    bias = jnp.where(k_idx < n_real, 0.0, -1e30).astype(jnp.float32)   # (1, Npad) row

    for h in range(num_heads):            # unrolled; one kernel step covers all heads
        sl = slice(h * dh, (h + 1) * dh)
        qh = q_ref[:, sl].astype(jnp.bfloat16)
        kh = k_ref[:, sl].astype(jnp.bfloat16)
        vh = v_ref[:, sl].astype(jnp.bfloat16)
        # Contract head dim directly -> no in-kernel k.T.
        s = jax.lax.dot_general(qh, kh, (((1,), (1,)), ((), ())),
                                preferred_element_type=jnp.float32)
        s = s * scale + bias
        m = jnp.max(s, axis=-1, keepdims=True)
        p = jnp.exp(s - m)
        l = jnp.sum(p, axis=-1, keepdims=True)
        o = jnp.dot(p.astype(jnp.bfloat16), vh, preferred_element_type=jnp.float32)
        o = o * pl.reciprocal(l, approx=True)   # EUP reciprocal instead of divide
        o_ref[:, sl] = o.astype(o_ref.dtype)


def attention(qkv, batch, n_pad, num_heads, scale, n_real):
    """qkv: [B*n_pad, 3*D] (q|k|v concatenated along columns) -> [B*n_pad, D] (bf16)."""
    M, three_d = qkv.shape
    D = three_d // 3
    kernel = functools.partial(_attention_kernel, num_heads=num_heads,
                               scale=scale, n_real=n_real)

    def col_spec(c):
        return pl.BlockSpec((n_pad, D), lambda b, _c=c: (b, _c))

    return pl.pallas_call(
        kernel,
        out_shape=jax.ShapeDtypeStruct((M, D), jnp.bfloat16),
        grid=(batch,),
        in_specs=[col_spec(0), col_spec(1), col_spec(2)],
        out_specs=pl.BlockSpec((n_pad, D), lambda b: (b, 0)),
        compiler_params=pltpu.CompilerParams(
            dimension_semantics=("parallel",),
            vmem_limit_bytes=32 * 1024 * 1024),
    )(qkv, qkv, qkv)


# ----------------------------------- parameters -----------------------------------------------

def init_params(key, *, depth=2, embed_dim=1024, num_heads=16, mlp_ratio=4,
                patch=14, in_chans=3, num_patches=4, out_dim=768):
    d = embed_dim
    hidden = mlp_ratio * d
    n_tok = num_patches + 1  # + cls token

    def nrm(k, shape, std=0.02, dtype=jnp.bfloat16):
        return (std * jax.random.normal(k, shape, jnp.float32)).astype(dtype)

    keys = jax.random.split(key, 8 + depth)
    params = {
        "patch": patch,
        "num_heads": num_heads,
        # Conv2d(3, D, k=14, s=14) expressed as (C*p*p, D) matmul weight (bf16 for the MXU).
        "pe_w": nrm(keys[0], (in_chans * patch * patch, d)),
        "pe_b": jnp.zeros((d,), jnp.float32),
        "cls_token": nrm(keys[1], (1, 1, d), dtype=jnp.float32),
        "pos_embed": nrm(keys[2], (1, n_tok, d), dtype=jnp.float32),
        "norm_g": jnp.ones((d,), jnp.float32),
        "norm_b": jnp.zeros((d,), jnp.float32),
        # Encoder.linear: nn.Linear(1024, 768)
        "head_w": nrm(keys[3], (d, out_dim)),
        "head_b": jnp.zeros((out_dim,), jnp.float32),
        "blocks": [],
    }
    for i in range(depth):
        bk = jax.random.split(keys[8 + i], 4)
        params["blocks"].append({
            "ln1_g": jnp.ones((d,), jnp.float32),
            "ln1_b": jnp.zeros((d,), jnp.float32),
            "qkv_w": nrm(bk[0], (d, 3 * d)),
            "qkv_b": jnp.zeros((3 * d,), jnp.float32),
            "proj_w": nrm(bk[1], (d, d)),
            "proj_b": jnp.zeros((d,), jnp.float32),
            "ln2_g": jnp.ones((d,), jnp.float32),
            "ln2_b": jnp.zeros((d,), jnp.float32),
            "fc1_w": nrm(bk[2], (d, hidden)),
            "fc1_b": jnp.zeros((hidden,), jnp.float32),
            "fc2_w": nrm(bk[3], (hidden, d)),
            "fc2_b": jnp.zeros((d,), jnp.float32),
        })
    return params


# ------------------------------------- forward ------------------------------------------------

def encoder_forward(params, x):
    """x: NCHW [B, 3, H, W] -> [B, 1 + num_patches, 768]."""
    B, C, H, W = x.shape
    p = params["patch"]
    nh, nw = H // p, W // p
    D = params["pe_b"].shape[0]
    n_heads = params["num_heads"]
    dh = D // n_heads
    scale = dh ** -0.5

    # Patch embed: Conv2d(k=p, s=p) == unfold patches + matmul (Pallas kernel).
    patches = (
        x.reshape(B, C, nh, p, nw, p)
        .transpose(0, 2, 4, 1, 3, 5)                 # [B, nh, nw, C, p, p]
        .reshape(B * nh * nw, C * p * p)
    )
    tok = fused_matmul(patches, params["pe_w"], params["pe_b"])        # [B*np, D] fp32
    tok = tok.reshape(B, nh * nw, D)

    # cls token + positional embedding, then pad sequence to a multiple of 8 sublanes.
    cls = jnp.broadcast_to(params["cls_token"], (B, 1, D)).astype(jnp.float32)
    x_tok = jnp.concatenate([cls, tok], axis=1) + params["pos_embed"]  # [B, N, D]
    n_tok = x_tok.shape[1]
    n_pad = ((n_tok + 7) // 8) * 8
    if n_pad != n_tok:
        x_tok = jnp.pad(x_tok, ((0, 0), (0, n_pad - n_tok), (0, 0)))
    xf = x_tok.reshape(B * n_pad, D)                                   # fp32 residual stream

    for blk in params["blocks"]:
        # ---- attention branch: LN1 fused into qkv matmul; residual fused into proj ----
        qkv = fused_matmul(xf, blk["qkv_w"], blk["qkv_b"],
                           ln=(blk["ln1_g"], blk["ln1_b"]),
                           out_dtype=jnp.bfloat16)                     # [B*Npad, 3D] bf16
        attn = attention(qkv, B, n_pad, n_heads, scale, n_tok)         # [B*Npad, D]  bf16
        xf = fused_matmul(attn, blk["proj_w"], blk["proj_b"], residual=xf)

        # ---- MLP branch: LN2 + GELU fused into fc1; residual fused into fc2 ----
        h1 = fused_matmul(xf, blk["fc1_w"], blk["fc1_b"],
                          ln=(blk["ln2_g"], blk["ln2_b"]), activation="gelu",
                          out_dtype=jnp.bfloat16)                      # [B*Npad, 4D] bf16
        xf = fused_matmul(h1, blk["fc2_w"], blk["fc2_b"], residual=xf)

    # Final LayerNorm fused into Encoder.linear (1024 -> 768).
    out = fused_matmul(xf, params["head_w"], params["head_b"],
                       ln=(params["norm_g"], params["norm_b"]))        # [B*Npad, 768] fp32
    out = out.reshape(B, n_pad, -1)[:, :n_tok, :]
    return out


# --------------------------------------- main -------------------------------------------------

if __name__ == "__main__":
    key = jax.random.PRNGKey(0)
    pkey, xkey = jax.random.split(key)

    params = init_params(pkey)                      # embed_dim=1024, heads=16, depth=2
    # Small image: 28x28 with patch 14 -> 2x2 = 4 patches, 5 tokens with cls.
    x = jax.random.normal(xkey, (2, 3, 28, 28), jnp.float32)

    out = encoder_forward(params, x)
    out = jax.block_until_ready(out)
    assert out.shape == (2, 5, 768), out.shape
    assert out.dtype == jnp.float32
    print("KERNEL_OK")
</pallas_src>

<mosaic_0001>
module attributes {stable_mosaic.version = 11 : i64} {
  func.func @_fused_mm_kernel(%arg0: i32, %arg1: i32, %arg2: memref<8x588xf32, #tpu.memory_space<vmem>>, %arg3: memref<588x512xbf16, #tpu.memory_space<vmem>>, %arg4: memref<1x512xf32, #tpu.memory_space<vmem>>, %arg5: memref<8x512xf32, #tpu.memory_space<vmem>>) attributes {dimension_semantics = [#tpu.dimension_semantics<parallel>, #tpu.dimension_semantics<parallel>], iteration_bounds = array<i64: 1, 2>, scalar_prefetch = 0 : i64, scratch_operands = 0 : i64, tpu.core_type = #tpu.core_type<tc>, window_params = [{transform_indices = @transform_0, window_bounds = array<i64: 8, 588>}, {transform_indices = @transform_1, window_bounds = array<i64: 588, 512>}, {transform_indices = @transform_2, window_bounds = array<i64: 1, 512>}, {transform_indices = @transform_3, window_bounds = array<i64: 8, 512>}]} {
    %c0 = arith.constant 0 : index
    %c0_0 = arith.constant 0 : index
    %0 = vector.load %arg2[%c0, %c0_0] : memref<8x588xf32, #tpu.memory_space<vmem>>, vector<8x588xf32>
    %1 = arith.truncf %0 : vector<8x588xf32> to vector<8x588xbf16>
    %c0_1 = arith.constant 0 : index
    %c0_2 = arith.constant 0 : index
    %2 = vector.load %arg3[%c0_1, %c0_2] : memref<588x512xbf16, #tpu.memory_space<vmem>>, vector<588x512xbf16>
    %cst = arith.constant dense<0.000000e+00> : vector<8x512xf32>
    %3 = tpu.matmul %1, %2, %cst {dimension_numbers = #tpu.dot_dimension_numbers<[1], [0], [0], [1], [0, 0, 1, 1], [], []>} : vector<8x588xbf16>, vector<588x512xbf16>, vector<8x512xf32> -> vector<8x512xf32>
    %c0_3 = arith.constant 0 : index
    %c0_4 = arith.constant 0 : index
    %4 = vector.load %arg4[%c0_3, %c0_4] : memref<1x512xf32, #tpu.memory_space<vmem>>, vector<1x512xf32>
    %5 = vector.broadcast %4 : vector<1x512xf32> to vector<8x512xf32>
    %6 = arith.addf %3, %5 : vector<8x512xf32>
    %c0_5 = arith.constant 0 : index
    %c0_6 = arith.constant 0 : index
    %7 = vector.load %arg5[%c0_5, %c0_6] : memref<8x512xf32, #tpu.memory_space<vmem>>, vector<8x512xf32>
    tpu.vector_store %arg5[%c0_5, %c0_6], %6 {strides = array<i32>} : memref<8x512xf32, #tpu.memory_space<vmem>>, vector<8x512xf32>,
    return
  }
  func.func @transform_0(%arg0: i32, %arg1: i32) -> (i32, i32) {
    %c0_i32 = arith.constant 0 : i32
    %c0_i32_0 = arith.constant 0 : i32
    return %arg0, %c0_i32 : i32, i32
  }
  func.func @transform_1(%arg0: i32, %arg1: i32) -> (i32, i32) {
    %c0_i32 = arith.constant 0 : i32
    %c0_i32_0 = arith.constant 0 : i32
    return %c0_i32, %arg1 : i32, i32
  }
  func.func @transform_2(%arg0: i32, %arg1: i32) -> (i32, i32) {
    %c0_i32 = arith.constant 0 : i32
    %c0_i32_0 = arith.constant 0 : i32
    return %c0_i32, %arg1 : i32, i32
  }
  func.func @transform_3(%arg0: i32, %arg1: i32) -> (i32, i32) {
    %c0_i32 = arith.constant 0 : i32
    return %arg0, %arg1 : i32, i32
  }
}

</mosaic_0001>

<bundles_post_ra>
// kernel: tpu_custom_call.1
= control target key start
LH: loop header
LB: loop body
LE: loop exit
PB: predicated region body
PF: predicated region fallthrough
CT: control target
= control target key end

     0   :  { %s2683_s0 = inlined_call_operand.hbm [shape: f32[8,588], index: 0, kind: input, shape index: {}]   ;;  %s2684_s1 = inlined_call_operand.hbm [shape: bf16[588,1024], index: 1, kind: input, shape index: {}]   ;;  %s2685_s2 = inlined_call_operand.hbm [shape: f32[1,1024], index: 2, kind: input, shape index: {}]   ;;  %s2686_s3 = inlined_call_operand.hbm [shape: f32[8,1024], index: 3, kind: output, shape index: {}]  }
   0x1   :  { %2692 = sst [smem:[#allocation12_spill]] %s2684_s1 }
   0x2   :  { %8 = vsyncpa [#allocation3], 0 }
   0x3   :  { %9 = vsyncpa [#allocation6], 0 }
   0x4   :  { %11 = vsyncpa [#allocation6 + $0x1], 0 }
   0x5   :  { %12 = vsyncpa [#allocation4], 0 }
   0x6   :  { %14 = vsyncpa [#allocation4 + $0x1], 0  ;;  %s2282_s12 = smov 0   ;;  %s2284_s13 = smov 0  }
   0x7   :  { %s2286_s14 = smov 0   ;;  %s2288_s15 = smov 0  }
   0x8   :  { %s2290_s16 = smov 0   ;;  %s2292_s17 = smov 0  }
   0x9 LB: > { %s29_s18 = sadd.s32 1, %s2248_s16  ;;  %s65_s19 = sadd.s32 1, %s2240_s14  ;;  %s2252_s17 = sphi %s2292_s17, %s20_s17   ;;  %s2248_s16 = sphi %s2290_s16, %s2712_s16   ;;  %s2244_s15 = sphi %s2288_s15, %s2711_s15   ;;  %s2240_s14 = sphi %s2286_s14, %s2710_s14   ;;  %s2236_s13 = sphi %s2284_s13, %s2709_s13   ;;  %s2232_s12 = sphi %s2282_s12, %s2708_s12  }
   0xa   : > { %p30_p0 = scmp.ge.s32.totalorder %s29_s18, 2  ;;  %p72_p1 = scmp.ne.s32.totalorder %s2240_s14, %s2236_s13 }
   0xb   : > { %p73_p2 = scmp.eq.s32.totalorder %s2252_s17, 0  ;;  %p1800_p5 = scmp.lt.s32.totalorder %s2252_s17, 2 }
   0xc   : > { %s2714_s18 = smov (%p30_p0, %s29_s18), 0  ;;  %s170_s21 = sand.u32 1, %s2252_s17  }
   0xd   : > { %p74_p4 = por %p73_p2, %p72_p1  ;;  %s62_s20 = ssub.s32 %s2248_s16, %s2714_s18 }
   0xe   : > { %p63_p6 = scmp.eq.s32.totalorder %s62_s20, 0  ;;  %s172_s22 = sand.u32 1, %s2240_s14  }
   0xf   : > { %s1749_s23 = sshll.u32 %s2248_s16, 8  ;;  %s1772_s25 = smul.u32 1184, %s172_s22 }
  0x10   : > { %s2330_s24 = scalar_select %p63_p6, %s2240_s14, %s65_s19  }
  0x11   : > { %s2693_s1 = sld [smem:[#allocation12_spill]]  ;;  %p2339_p7 = pnand %p1800_p5, %p74_p4 }
  0x12   : > { %s174_s30 = scalar_lea.vmem [#allocation5], %s1772_s25  ;;  %s2345_s5 = scalar_lea.sflag [#allocation6], %s170_s21 }
  0x13   : > { %s181_s4 = sshll.u32 %s174_s30, 4  ;;  %p2080_p9 = pneg %p2339_p7  ;;  %s2343_s4 = int_to_ptr.vmem [resolvable:$true] %s181_s4 }
  0x17   : > { %s2337_s28 = scalar_lea.hbm %s2693_s1, %s1749_s23  ;;  %s2083_s9 = scalar_lea.hbm %s2693_s1, 37888 }
  0x18   : > { %s2078_s6 = scalar_lea.hbm %s2337_s28, 18944  ;;  %p2084_p12 = scmp.lt.u32.totalorder %s2337_s28, %s2693_s1 }
  0x19   : > { %p2079_p8 = scmp.ne.s32.totalorder %s2337_s28, %s2078_s6  ;;  %p2085_p13 = scmp.lt.u32.totalorder %s2083_s9, %s2078_s6 }
  0x1a   : > { %p2087_p2 = scmp.lt.u32.totalorder %s2078_s6, %s2337_s28 }
  0x1b   : > { %p2081_p10 = pnand %p2080_p9, %p2079_p8  ;;  %p2086_p0 = por %p2085_p13, %p2084_p12 }
  0x1d   : > { %p2082_p11 = pneg %p2081_p10  ;;  %p2088_p4 = por %p2087_p2, %p2086_p0 }
  0x1f   : > { %p2089_p5 = pnand %p2088_p4, %p2082_p11 }
  0x21   : > { %2092 = shalt.err (!%p2089_p5)
}
  0x22   : > { %s2093_s19 = scalar_lea.vmem %s2343_s4, 18944  ;;  %s2254_s20 = smov [#allocation5]  }
  0x23   : > { %p2094_p6 = scmp.ne.s32.totalorder %s2343_s4, %s2093_s19  ;;  %s2098_s21 = sshll.u32 %s2254_s20, 4  ;;  %s2099_s21 = int_to_ptr.vmem [resolvable:$false] %s2098_s21 }
  0x24   : > { %s2100_s23 = scalar_lea.vmem %s2099_s21, 37888  ;;  %p2101_p3 = scmp.lt.s32.totalorder %s2343_s4, %s2099_s21 }
  0x25   : > { %p2096_p8 = pnand %p2094_p6, %p2080_p9  ;;  %p2102_p12 = scmp.lt.s32.totalorder %s2100_s23, %s2093_s19 }
  0x27   : > { %p2097_p10 = pneg %p2096_p8  ;;  %p2103_p13 = por %p2102_p12, %p2101_p3 }
  0x29   : > { %p2104_p0 = pnand %p2103_p13, %p2097_p10 }
  0x2b   : > { %2107 = shalt.err (!%p2104_p0)
}
  0x2c   : > { %s2255_s25 = smov 512   ;;  %s2256_s26 = smov 256  }
  0x2d   : > { %s2257_s27 = smov 16   ;;  %s2374_s30 = sadd.s32 4294967295, %s2252_s17  }
  0x2e   : > { %1791 = dma.hbm_to_vmem [thread:$0]  (!%p2339_p7), %s2337_s28, 18944, %s2343_s4, %s2345_s5, %s2255_s25, %s2256_s26, %s2257_s27  }
  0x2f   : > { %s1579_s6 = sadd.s32 4294967294, %s2252_s17   ;;  %p78_p3 = scmp.ne.s32.totalorder %s2236_s13, %s2232_s12 }
  0x30   : > { %p2687_p11 = scmp.eq.s32.totalorder %s2374_s30, 0  ;;  %p130_p2 = scmp.eq.s32.totalorder %s2374_s30, 1 }
  0x31   : > { %p136_p4 = scmp.eq.s32.totalorder %s1579_s6, 1  ;;  %p1580_p6 = scmp.ge.s32.totalorder %s2252_s17, 1 }
  0x32   : > { %p2383_p5 = por %p2687_p11, %p78_p3  ;;  %p2391_p8 = por %p130_p2, %p72_p1 }
  0x33   : > { %p2395_p10 = por %p136_p4, %p78_p3  ;;  %p143_p12 = scmp.lt.s32.totalorder %s2252_s17, 3 }
  0x34   : > { %s2695_s7 = scalar_select %p2383_p5, 1, 0 }
  0x35   : > { %s2696_s28 = scalar_select %p2391_p8, 1, 0 }
  0x36   : > { %s2697_s4 = scalar_select %p2395_p10, 1, 0 }
  0x37   : > { %s1585_s8 = sshll.u32 %s172_s22, 2  ;;  %p2402_p13 = pnand %p1580_p6, %p143_p12 }
  0x38   : > { %s2258_s10 = smov [#allocation2]   ;;  %s1750_s19 = sshll.u32 %s2248_s16, 6 }
  0x39   : > { %s2698_s9 = scalar_select %p2402_p13, 1, 0 }
  0x3a   : > { %s159_s11 = sshll.u32 %s2258_s10, 4  ;;  %p1784_p1 = pneg %p2402_p13  ;;  %s2406_s11 = int_to_ptr.vmem [resolvable:$true] %s159_s11 }
  0x3b   : > { %s2414_s23 = scalar_lea.hbm %s2685_s2, %s1750_s19  ;;  %s195_s22 = scalar_lea.vmem [#allocation7], %s1585_s8 }
  0x3c   : > { %s203_s25 = sshll.u32 %s195_s22, 4  ;;  %p2418_p0 = pnand %p1784_p1, %p2687_p11  ;;  %s204_s25 = int_to_ptr.vmem [resolvable:$true] %s203_s25 }
  0x3d   : > { %s2108_s27 = scalar_lea.hbm %s2414_s23, 64  ;;  %s2113_s19 = scalar_lea.hbm %s2685_s2, 128 }
  0x3e   : > { %s2699_s26 = scalar_select %p2418_p0, 1, 0 }
  0x3f   : > { %p2109_p3 = scmp.ne.s32.totalorder %s2414_s23, %s2108_s27  ;;  %p2114_p6 = scmp.lt.u32.totalorder %s2414_s23, %s2685_s2 }
  0x40   : > { %p2115_p12 = scmp.lt.u32.totalorder %s2113_s19, %s2108_s27  ;;  %p2117_p11 = scmp.lt.u32.totalorder %s2108_s27, %s2414_s23 }
  0x41   : > { %p2111_p2 = pnand %p2109_p3, %p2080_p9 }
  0x42   : > { %p2116_p1 = por %p2115_p12, %p2114_p6 }
  0x43   : > { %p2112_p4 = pneg %p2111_p2 }
  0x44   : > { %p2118_p10 = por %p2117_p11, %p2116_p1 }
  0x46   : > { %p2119_p8 = pnand %p2118_p10, %p2112_p4 }
  0x48   : > { %2122 = shalt.err (!%p2119_p8)
}
  0x49   : > { %s2123_s8 = scalar_lea.vmem %s204_s25, 64  ;;  %s2259_s22 = smov [#allocation7]  }
  0x4a   : > { %p2124_p5 = scmp.ne.s32.totalorder %s204_s25, %s2123_s8  ;;  %s2128_s6 = sshll.u32 %s2259_s22, 4  ;;  %s2129_s6 = int_to_ptr.vmem [resolvable:$false] %s2128_s6 }
  0x4b   : > { %s2130_s10 = scalar_lea.vmem %s2129_s6, 128  ;;  %p2131_p13 = scmp.lt.s32.totalorder %s204_s25, %s2129_s6 }
  0x4c   : > { %p2126_p3 = pnand %p2124_p5, %p2080_p9  ;;  %p2132_p0 = scmp.lt.s32.totalorder %s2130_s10, %s2123_s8 }
  0x4e   : > { %p2127_p2 = pneg %p2126_p3  ;;  %p2133_p6 = por %p2132_p0, %p2131_p13 }
  0x50   : > { %p2134_p12 = pnand %p2133_p6, %p2127_p2 }
  0x52   : > { %2137 = shalt.err (!%p2134_p12)
}
  0x53   : > { %1794 = dma.hbm_to_vmem [thread:$0]  (!%p2339_p7), %s2414_s23, 64, %s204_s25, %s2345_s5  }
  0x54   : > { %s2138_s20 = scalar_lea.hbm %s2683_s0, 640  ;;  %p2700_p11 = scmp.ne.s32.totalorder %s2699_s26, 0 }
  0x55   : > { %p2139_p9 = scmp.ne.s32.totalorder %s2683_s0, %s2138_s20  ;;  %p2145_p13 = scmp.lt.u32.totalorder %s2138_s20, %s2683_s0 }
  0x56   : > { %p2140_p5 = pneg %p2700_p11 }
  0x58   : > { %p2141_p8 = pnand %p2140_p5, %p2139_p9 }
  0x5a   : > { %p2142_p10 = pneg %p2141_p8 }
  0x5c   : > { %p2147_p0 = pnand %p2145_p13, %p2142_p10 }
  0x5e   : > { %2150 = shalt.err (!%p2147_p0)
}
  0x5f   : > { %s2151_s29 = scalar_lea.vmem %s2406_s11, 640  ;;  %p2159_p3 = scmp.lt.s32.totalorder %s2406_s11, %s2406_s11 }
  0x60   : > { %p2152_p7 = scmp.ne.s32.totalorder %s2406_s11, %s2151_s29  ;;  %p2160_p2 = scmp.lt.s32.totalorder %s2151_s29, %s2151_s29 }
  0x62   : > { %p2154_p4 = pnand %p2152_p7, %p2140_p5  ;;  %p2161_p6 = por %p2160_p2, %p2159_p3 }
  0x64   : > { %p2155_p1 = pneg %p2154_p4 }
  0x66   : > { %p2162_p12 = pnand %p2161_p6, %p2155_p1 }
  0x68   : > { %2165 = shalt.err (!%p2162_p12)
}
  0x69   : > { %1787 = dma.hbm_to_vmem [thread:$0]  (!%p2700_p11), %s2683_s0, 640, %s2406_s11, [#allocation3]  }
  0x6a   : > { %p2701_p9 = scmp.ne.s32.totalorder %s2698_s9, 0 }
  0x6b   : > { %p2702_p8 = scmp.eq.s32.totalorder (!%p2701_p9), %s2374_s30, 0 }
  0x6c   : > { %212 = sbr.rel (%p2701_p9) target bundleno = 499 (0x1f3), region = 32 }
  0x73   : > { %2219 = dma.done.wait (%p2702_p8), [#allocation3], 640   ;;  %p2703_p5 = pmov %p2702_p8 }
  0x74   : > { %s218_s23 = sand.u32 1, %s2374_s30   ;;  %s2471_s25 = sand.u32 1, %s2236_s13  }
  0x75   : > { %2221 = vsyncadd (%p2703_p5), [#allocation3], 4294966656  ;;  %s1773_s26 = smul.u32 1184, %s2471_s25  ;;  %s219_s6 = scalar_lea.sflag [#allocation6], %s218_s23 }
  0x76   : > { %p2704_p11 = scmp.ne.s32.totalorder %s2695_s7, 0 }
  0x77   : > { %s2474_s10 = scalar_lea.vmem [#allocation5], %s1773_s26 }
  0x78   : > { %2223 = dma.done.wait (%p2704_p11), %s219_s6, 19008  }
  0x79   : > { %2225 = vsyncadd (%p2704_p11), %s219_s6, 4294948288  ;;  %v1856_v0 = vld [vmem:[%s2474_s10 + $0x4] ss:$16 sps:$4 sm:$0xff]   ;;  %v1858_v1 = vld [vmem:[%s2474_s10 + $0xc] ss:$16 sps:$4 sm:$0xff]   ;;  %vm1183_vm0 = vcmask 1045504  }
  0x7a   : > { %1196 = vmatprep.subr.bf16.mxu0 %v1856_v0  ;;  %v1860_v2 = vld [vmem:[%s2474_s10] ss:$16 sps:$4 sm:$0xff]   ;;  %v1861_v3 = vld [vmem:[%s2474_s10 + $0x8] ss:$16 sps:$4 sm:$0xff]   ;;  %1319 = vmatprep.subr.bf16.mxu1 %v1858_v1  ;;  %v1862_v4 = vld [vmem:[%s2474_s10 + $0x24] ss:$16 sps:$4 sm:$0xff]  }
  0x7b   : > { %1197 = vmatpush1.bf16.msra.mxu0 %v1860_v2  ;;  %1320 = vmatpush1.bf16.msra.mxu1 %v1861_v3  ;;  %v1864_v5 = vld [vmem:[%s2474_s10 + $0x2c] ss:$16 sps:$4 sm:$0xff]   ;;  %v1866_v6 = vld [vmem:[%s2474_s10 + $0x20] ss:$16 sps:$4 sm:$0xff]   ;;  %v1867_v7 = vld [vmem:[%s2474_s10 + $0x28] ss:$16 sps:$4 sm:$0xff]  }
  0x7c   : > { %1198 = vmatprep.subr.bf16.mxu0 %v1862_v4  ;;  %1321 = vmatprep.subr.bf16.mxu1 %v1864_v5  ;;  %v1868_v8 = vld [vmem:[%s2474_s10 + $0x44] ss:$16 sps:$4 sm:$0xff]   ;;  %v1870_v9 = vld [vmem:[%s2474_s10 + $0x4c] ss:$16 sps:$4 sm:$0xff]   ;;  %v1872_v10 = vld [vmem:[%s2474_s10 + $0x40] ss:$16 sps:$4 sm:$0xff]  }
  0x7d   : > { %v1873_v11 = vld [vmem:[%s2474_s10 + $0x48] ss:$16 sps:$4 sm:$0xff]   ;;  %v1874_v12 = vld [vmem:[%s2474_s10 + $0x64] ss:$16 sps:$4 sm:$0xff]   ;;  %v1876_v13 = vld [vmem:[%s2474_s10 + $0x6c] ss:$16 sps:$4 sm:$0xff]  }
  0x7e   : > { %v1878_v14 = vld [vmem:[%s2474_s10 + $0x60] ss:$16 sps:$4 sm:$0xff]   ;;  %v1879_v15 = vld [vmem:[%s2474_s10 + $0x68] ss:$16 sps:$4 sm:$0xff]   ;;  %v1880_v16 = vld [vmem:[%s2474_s10 + $0x84] ss:$16 sps:$4 sm:$0xff]  }
  0x7f   : > { %1199 = vmatpush1.bf16.msra.mxu0 %v1866_v6  ;;  %1322 = vmatpush1.bf16.msra.mxu1 %v1867_v7  ;;  %v1882_v17 = vld [vmem:[%s2474_s10 + $0x8c] ss:$16 sps:$4 sm:$0xff]   ;;  %v1884_v18 = vld [vmem:[%s2474_s10 + $0x80] ss:$16 sps:$4 sm:$0xff]   ;;  %v1885_v19 = vld [vmem:[%s2474_s10 + $0x88] ss:$16 sps:$4 sm:$0xff]  }
  0x80   : > { %1200 = vmatprep.subr.bf16.mxu0 %v1868_v8  ;;  %1323 = vmatprep.subr.bf16.mxu1 %v1870_v9  ;;  %v1886_v20 = vld [vmem:[%s2474_s10 + $0xa4] ss:$16 sps:$4 sm:$0xff]   ;;  %v1888_v21 = vld [vmem:[%s2474_s10 + $0xac] ss:$16 sps:$4 sm:$0xff]   ;;  %v1890_v22 = vld [vmem:[%s2474_s10 + $0xa0] ss:$16 sps:$4 sm:$0xff]  }
  0x81   : > { %v1891_v23 = vld [vmem:[%s2474_s10 + $0xa8] ss:$16 sps:$4 sm:$0xff]   ;;  %v1892_v24 = vld [vmem:[%s2474_s10 + $0xc4] ss:$16 sps:$4 sm:$0xff]   ;;  %v1894_v25 = vld [vmem:[%s2474_s10 + $0xcc] ss:$16 sps:$4 sm:$0xff]  }
  0x82   : > { %v1896_v26 = vld [vmem:[%s2474_s10 + $0xc0] ss:$16 sps:$4 sm:$0xff]   ;;  %v1897_v27 = vld [vmem:[%s2474_s10 + $0xc8] ss:$16 sps:$4 sm:$0xff]   ;;  %v1898_v28 = vld [vmem:[%s2474_s10 + $0xe4] ss:$16 sps:$4 sm:$0xff]  }
  0x83   : > { %1201 = vmatpush1.bf16.msra.mxu0 %v1872_v10  ;;  %1324 = vmatpush1.bf16.msra.mxu1 %v1873_v11  ;;  %v1900_v29 = vld [vmem:[%s2474_s10 + $0xec] ss:$16 sps:$4 sm:$0xff]   ;;  %v1902_v30 = vld [vmem:[%s2474_s10 + $0xe0] ss:$16 sps:$4 sm:$0xff]   ;;  %v1903_v31 = vld [vmem:[%s2474_s10 + $0xe8] ss:$16 sps:$4 sm:$0xff]  }
  0x84   : > { %1202 = vmatprep.subr.bf16.mxu0 %v1874_v12  ;;  %1325 = vmatprep.subr.bf16.mxu1 %v1876_v13  ;;  %v1904_v32 = vld [vmem:[%s2474_s10 + $0x104] ss:$16 sps:$4 sm:$0xff]   ;;  %v1906_v33 = vld [vmem:[%s2474_s10 + $0x10c] ss:$16 sps:$4 sm:$0xff]   ;;  %v1908_v34 = vld [vmem:[%s2474_s10 + $0x100] ss:$16 sps:$4 sm:$0xff]  }
  0x85   : > { %v1909_v35 = vld [vmem:[%s2474_s10 + $0x108] ss:$16 sps:$4 sm:$0xff]   ;;  %v1910_v36 = vld [vmem:[%s2474_s10 + $0x124] ss:$16 sps:$4 sm:$0xff]   ;;  %v1912_v37 = vld [vmem:[%s2474_s10 + $0x12c] ss:$16 sps:$4 sm:$0xff]  }
  0x86   : > { %v1914_v38 = vld [vmem:[%s2474_s10 + $0x120] ss:$16 sps:$4 sm:$0xff]   ;;  %v1915_v39 = vld [vmem:[%s2474_s10 + $0x128] ss:$16 sps:$4 sm:$0xff]   ;;  %v1916_v40 = vld [vmem:[%s2474_s10 + $0x144] ss:$16 sps:$4 sm:$0xff]  }
  0x87   : > { %1203 = vmatpush1.bf16.msra.mxu0 %v1878_v14  ;;  %1326 = vmatpush1.bf16.msra.mxu1 %v1879_v15  ;;  %v1918_v41 = vld [vmem:[%s2474_s10 + $0x14c] ss:$16 sps:$4 sm:$0xff]   ;;  %v1920_v42 = vld [vmem:[%s2474_s10 + $0x140] ss:$16 sps:$4 sm:$0xff]   ;;  %v1921_v43 = vld [vmem:[%s2474_s10 + $0x148] ss:$16 sps:$4 sm:$0xff]  }
  0x88   : > { %1204 = vmatprep.subr.bf16.mxu0 %v1880_v16  ;;  %1327 = vmatprep.subr.bf16.mxu1 %v1882_v17  ;;  %v1922_v44 = vld [vmem:[%s2474_s10 + $0x164] ss:$16 sps:$4 sm:$0xff]   ;;  %v1924_v45 = vld [vmem:[%s2474_s10 + $0x16c] ss:$16 sps:$4 sm:$0xff]   ;;  %v1926_v47 = vld [vmem:[%s2474_s10 + $0x160] ss:$16 sps:$4 sm:$0xff]  }
  0x89   : > { %v264_v46 = vld [vmem:[#allocation2 + $0x8] sm:$0xff]  ;;  %v1927_v49 = vld [vmem:[%s2474_s10 + $0x168] ss:$16 sps:$4 sm:$0xff]   ;;  %v1930_v51 = vld [vmem:[%s2474_s10 + $0x18c] ss:$16 sps:$4 sm:$0xff]   ;;  %vm1179_vm1 = vcmask 621568  }
  0x8a   : > { %v269_v48 = vpack.c.bf16 %v264_v46, %v264_v46  ;;  %v1928_v50 = vld [vmem:[%s2474_s10 + $0x184] ss:$16 sps:$4 sm:$0xff]   ;;  %v1932_v52 = vld [vmem:[%s2474_s10 + $0x180] ss:$16 sps:$4 sm:$0xff]   ;;  %v1933_v53 = vld [vmem:[%s2474_s10 + $0x188] ss:$16 sps:$4 sm:$0xff]  }
  0x8b   : > { %1205 = vmatpush1.bf16.msra.mxu0 %v1884_v18  ;;  %1328 = vmatpush1.bf16.msra.mxu1 %v1885_v19  ;;  %v1934_v54 = vld [vmem:[%s2474_s10 + $0x1a4] ss:$16 sps:$4 sm:$0xff]   ;;  %v1936_v55 = vld [vmem:[%s2474_s10 + $0x1ac] ss:$16 sps:$4 sm:$0xff]   ;;  %v1938_v56 = vld [vmem:[%s2474_s10 + $0x1a0] ss:$16 sps:$4 sm:$0xff]  }
  0x8c   : > { %1206 = vmatprep.subr.bf16.mxu0 %v1886_v20  ;;  %1329 = vmatprep.subr.bf16.mxu1 %v1888_v21  ;;  %v1939_v57 = vld [vmem:[%s2474_s10 + $0x1a8] ss:$16 sps:$4 sm:$0xff]   ;;  %v1940_v58 = vld [vmem:[%s2474_s10 + $0x1c4] ss:$16 sps:$4 sm:$0xff]   ;;  %v1942_v59 = vld [vmem:[%s2474_s10 + $0x1cc] ss:$16 sps:$4 sm:$0xff]  }
  0x8d   : > { %1228 = vmatprep.mubr.bf16.mxu0 %v269_v48  ;;  %1351 = vmatprep.mubr.bf16.mxu1 %v269_v48  ;;  %v1944_v60 = vld [vmem:[%s2474_s10 + $0x1c0] ss:$16 sps:$4 sm:$0xff]   ;;  %v1945_v61 = vld [vmem:[%s2474_s10 + $0x1c8] ss:$16 sps:$4 sm:$0xff]   ;;  %v1946_v62 = vld [vmem:[%s2474_s10 + $0x1e4] ss:$16 sps:$4 sm:$0xff]  }
  0x8e   : > { %v1948_v63 = vld [vmem:[%s2474_s10 + $0x1ec] ss:$16 sps:$4 sm:$0xff]   ;;  %v1950_v0 = vld [vmem:[%s2474_s10 + $0x1e0] ss:$16 sps:$4 sm:$0xff]   ;;  %v1951_v1 = vld [vmem:[%s2474_s10 + $0x1e8] ss:$16 sps:$4 sm:$0xff]  }
  0x8f   : > { %1207 = vmatpush1.bf16.msra.mxu0 %v1890_v22  ;;  %1330 = vmatpush1.bf16.msra.mxu1 %v1891_v23  ;;  %v263_v2 = vld [vmem:[#allocation2] sm:$0xff]  ;;  %v1954_v3 = vld [vmem:[%s2474_s10 + $0x204] ss:$16 sps:$4 sm:$0xff]   ;;  %v1952_v6 = vld [vmem:[%s2474_s10 + $0x200] ss:$16 sps:$4 sm:$0xff]   ;;  %s1590_s30 = sshll.u32 %s2471_s25, 2 }
  0x90   : > { %1208 = vmatprep.subr.bf16.mxu0 %v1892_v24  ;;  %1331 = vmatprep.subr.bf16.mxu1 %v1894_v25  ;;  %v1957_v4 = vld [vmem:[%s2474_s10 + $0x20c] ss:$16 sps:$4 sm:$0xff]   ;;  %v268_v5 = vpack.c.bf16 %v263_v2, %v263_v2  ;;  %v1955_v7 = vld [vmem:[%s2474_s10 + $0x208] ss:$16 sps:$4 sm:$0xff]   ;;  %v1960_v8 = vld [vmem:[%s2474_s10 + $0x224] ss:$16 sps:$4 sm:$0xff]  }
  0x91   : > { %v1963_v9 = vld [vmem:[%s2474_s10 + $0x22c] ss:$16 sps:$4 sm:$0xff]   ;;  %v1958_v10 = vld [vmem:[%s2474_s10 + $0x220] ss:$16 sps:$4 sm:$0xff]   ;;  %v1961_v11 = vld [vmem:[%s2474_s10 + $0x228] ss:$16 sps:$4 sm:$0xff]  }
  0x92   : > { %v1966_v12 = vld [vmem:[%s2474_s10 + $0x244] ss:$16 sps:$4 sm:$0xff]   ;;  %v1969_v13 = vld [vmem:[%s2474_s10 + $0x24c] ss:$16 sps:$4 sm:$0xff]   ;;  %v1964_v14 = vld [vmem:[%s2474_s10 + $0x240] ss:$16 sps:$4 sm:$0xff]  }
  0x93   : > { %1209 = vmatpush1.bf16.msra.mxu0 %v1896_v26  ;;  %1332 = vmatpush1.bf16.msra.mxu1 %v1897_v27  ;;  %v1967_v15 = vld [vmem:[%s2474_s10 + $0x248] ss:$16 sps:$4 sm:$0xff]   ;;  %v1972_v16 = vld [vmem:[%s2474_s10 + $0x264] ss:$16 sps:$4 sm:$0xff]   ;;  %v1975_v17 = vld [vmem:[%s2474_s10 + $0x26c] ss:$16 sps:$4 sm:$0xff]  }
  0x94   : > { %1210 = vmatprep.subr.bf16.mxu0 %v1898_v28  ;;  %1333 = vmatprep.subr.bf16.mxu1 %v1900_v29  ;;  %v1970_v18 = vld [vmem:[%s2474_s10 + $0x260] ss:$16 sps:$4 sm:$0xff]   ;;  %v1973_v19 = vld [vmem:[%s2474_s10 + $0x268] ss:$16 sps:$4 sm:$0xff]   ;;  %v1978_v20 = vld [vmem:[%s2474_s10 + $0x284] ss:$16 sps:$4 sm:$0xff]  }
  0x95   : > { %v1981_v21 = vld [vmem:[%s2474_s10 + $0x28c] ss:$16 sps:$4 sm:$0xff]   ;;  %v1976_v22 = vld [vmem:[%s2474_s10 + $0x280] ss:$16 sps:$4 sm:$0xff]   ;;  %v1979_v23 = vld [vmem:[%s2474_s10 + $0x288] ss:$16 sps:$4 sm:$0xff]  }
  0x96   : > { %v1984_v24 = vld [vmem:[%s2474_s10 + $0x2a4] ss:$16 sps:$4 sm:$0xff]   ;;  %v1987_v25 = vld [vmem:[%s2474_s10 + $0x2ac] ss:$16 sps:$4 sm:$0xff]   ;;  %v1982_v26 = vld [vmem:[%s2474_s10 + $0x2a0] ss:$16 sps:$4 sm:$0xff]  }
  0x97   : > { %1211 = vmatpush1.bf16.msra.mxu0 %v1902_v30  ;;  %1334 = vmatpush1.bf16.msra.mxu1 %v1903_v31  ;;  %v1985_v27 = vld [vmem:[%s2474_s10 + $0x2a8] ss:$16 sps:$4 sm:$0xff]   ;;  %v1990_v28 = vld [vmem:[%s2474_s10 + $0x2c4] ss:$16 sps:$4 sm:$0xff]   ;;  %v1993_v29 = vld [vmem:[%s2474_s10 + $0x2cc] ss:$16 sps:$4 sm:$0xff]  }
  0x98   : > { %1212 = vmatprep.subr.bf16.mxu0 %v1904_v32  ;;  %1335 = vmatprep.subr.bf16.mxu1 %v1906_v33  ;;  %v266_v30 = vld [vmem:[#allocation2 + $0x18] sm:$0xff]  ;;  %v1991_v33 = vld [vmem:[%s2474_s10 + $0x2c8] ss:$16 sps:$4 sm:$0xff]   ;;  %s1591_s7 = sshll.u32 %s2471_s25, 5  ;;  %s231_s9 = scalar_lea.vmem [#allocation7], %s1590_s30 }
  0x99   : > { %v1988_v31 = vld [vmem:[%s2474_s10 + $0x2c0] ss:$16 sps:$4 sm:$0xff]   ;;  %v271_v32 = vpack.c.bf16 %v266_v30, %v266_v30  ;;  %v2014_v46 = vld [vmem:[%s2474_s10 + $0x344] ss:$16 sps:$4 sm:$0xff]   ;;  %s1751_s11 = sshll.u32 %s2244_s15, 9  ;;  %s258_s27 = scalar_lea.vmem [#allocation8], %s1591_s7 }
  0x9a   : > { %v2012_v48 = vld [vmem:[%s2474_s10 + $0x340] ss:$16 sps:$4 sm:$0xff]   ;;  %v2044_v2 = vld [vmem:[%s2474_s10 + $0x3e4] ss:$16 sps:$4 sm:$0xff]   ;;  %s1463_s19 = sshll.u32 %s258_s27, 4  ;;  %s2634_s8 = scalar_lea.hbm %s2686_s3, %s1751_s11  ;;  %s2636_s19 = int_to_ptr.vmem [resolvable:$true] %s1463_s19 }
  0x9b   : > { %1213 = vmatpush1.bf16.msra.mxu0 %v1908_v34  ;;  %1336 = vmatpush1.bf16.msra.mxu1 %v1909_v35  ;;  %v1996_v34 = vld [vmem:[%s2474_s10 + $0x2e4] ss:$16 sps:$4 sm:$0xff]   ;;  %v1999_v35 = vld [vmem:[%s2474_s10 + $0x2ec] ss:$16 sps:$4 sm:$0xff]   ;;  %s1447_s15 = scalar_lea.sflag [#allocation4], %s2471_s25  ;;  %s2166_s22 = scalar_lea.vmem %s2636_s19, 512 }
  0x9c   : > { %1214 = vmatprep.subr.bf16.mxu0 %v1910_v36  ;;  %1337 = vmatprep.subr.bf16.mxu1 %v1912_v37  ;;  %v1994_v36 = vld [vmem:[%s2474_s10 + $0x2e0] ss:$16 sps:$4 sm:$0xff]   ;;  %v1997_v37 = vld [vmem:[%s2474_s10 + $0x2e8] ss:$16 sps:$4 sm:$0xff]   ;;  %p2167_p10 = scmp.ne.s32.totalorder %s2636_s19, %s2166_s22  ;;  %p2705_p13 = scmp.ne.s32.totalorder %s2696_s28, 0 }
  0x9d   : > { %s2261_s29 = smov [#allocation8]  }
  0x9e   : > { %p2168_p0 = pnand %p2167_p10, %p2705_p13  ;;  %s2170_s1 = sshll.u32 %s2261_s29, 4  ;;  %s2171_s1 = int_to_ptr.vmem [resolvable:$false] %s2170_s1 }
  0x9f   : > { %1215 = vmatpush1.bf16.msra.mxu0 %v1914_v38  ;;  %1338 = vmatpush1.bf16.msra.mxu1 %v1915_v39  ;;  %v2002_v38 = vld [vmem:[%s2474_s10 + $0x304] ss:$16 sps:$4 sm:$0xff]   ;;  %v2005_v39 = vld [vmem:[%s2474_s10 + $0x30c] ss:$16 sps:$4 sm:$0xff]   ;;  %s2172_s5 = scalar_lea.vmem %s2171_s1, 1024  ;;  %p2173_p4 = scmp.lt.s32.totalorder %s2636_s19, %s2171_s1 }
  0xa0   : > { %1216 = vmatprep.subr.bf16.mxu0 %v1916_v40  ;;  %1339 = vmatprep.subr.bf16.mxu1 %v1918_v41  ;;  %v2000_v40 = vld [vmem:[%s2474_s10 + $0x300] ss:$16 sps:$4 sm:$0xff]   ;;  %v2003_v41 = vld [vmem:[%s2474_s10 + $0x308] ss:$16 sps:$4 sm:$0xff]   ;;  %p2169_p7 = pneg %p2168_p0  ;;  %p2174_p1 = scmp.lt.s32.totalorder %s2172_s5, %s2166_s22 }
  0xa2   : > { %p2175_p3 = por %p2174_p1, %p2173_p4 }
  0xa3   : > { %1217 = vmatpush1.bf16.msra.mxu0 %v1920_v42  ;;  %1340 = vmatpush1.bf16.msra.mxu1 %v1921_v43  ;;  %v2008_v42 = vld [vmem:[%s2474_s10 + $0x324] ss:$16 sps:$4 sm:$0xff]   ;;  %v2011_v43 = vld [vmem:[%s2474_s10 + $0x32c] ss:$16 sps:$4 sm:$0xff]  }
  0xa4   : > { %1218 = vmatprep.subr.bf16.mxu0 %v1922_v44  ;;  %1341 = vmatprep.subr.bf16.mxu1 %v1924_v45  ;;  %v2006_v44 = vld [vmem:[%s2474_s10 + $0x320] ss:$16 sps:$4 sm:$0xff]   ;;  %v2009_v45 = vld [vmem:[%s2474_s10 + $0x328] ss:$16 sps:$4 sm:$0xff]   ;;  %p2176_p2 = pnand %p2175_p3, %p2169_p7 }
  0xa7   : > { %1219 = vmatpush1.bf16.msra.mxu0 %v1926_v47  ;;  %1342 = vmatpush1.bf16.msra.mxu1 %v1927_v49  ;;  %v2017_v47 = vld [vmem:[%s2474_s10 + $0x34c] ss:$16 sps:$4 sm:$0xff]   ;;  %v2015_v49 = vld [vmem:[%s2474_s10 + $0x348] ss:$16 sps:$4 sm:$0xff]  }
  0xa8   : > { %1220 = vmatprep.subr.bf16.mxu0 %v1928_v50  ;;  %1343 = vmatprep.subr.bf16.mxu1 %v1930_v51  ;;  %v2020_v50 = vld [vmem:[%s2474_s10 + $0x364] ss:$16 sps:$4 sm:$0xff]   ;;  %v2023_v51 = vld [vmem:[%s2474_s10 + $0x36c] ss:$16 sps:$4 sm:$0xff]  }
  0xab   : > { %1221 = vmatpush1.bf16.msra.mxu0 %v1932_v52  ;;  %1344 = vmatpush1.bf16.msra.mxu1 %v1933_v53  ;;  %v2018_v52 = vld [vmem:[%s2474_s10 + $0x360] ss:$16 sps:$4 sm:$0xff]   ;;  %v2021_v53 = vld [vmem:[%s2474_s10 + $0x368] ss:$16 sps:$4 sm:$0xff]  }
  0xac   : > { %1222 = vmatprep.subr.bf16.mxu0 %v1934_v54  ;;  %1345 = vmatprep.subr.bf16.mxu1 %v1936_v55  ;;  %v2026_v54 = vld [vmem:[%s2474_s10 + $0x384] ss:$16 sps:$4 sm:$0xff]   ;;  %v2029_v55 = vld [vmem:[%s2474_s10 + $0x38c] ss:$16 sps:$4 sm:$0xff]  }
  0xaf   : > { %1223 = vmatpush1.bf16.msra.mxu0 %v1938_v56  ;;  %1346 = vmatpush1.bf16.msra.mxu1 %v1939_v57  ;;  %v2024_v56 = vld [vmem:[%s2474_s10 + $0x380] ss:$16 sps:$4 sm:$0xff]   ;;  %v2027_v57 = vld [vmem:[%s2474_s10 + $0x388] ss:$16 sps:$4 sm:$0xff]  }
  0xb0   : > { %1224 = vmatprep.subr.bf16.mxu0 %v1940_v58  ;;  %1347 = vmatprep.subr.bf16.mxu1 %v1942_v59  ;;  %v2032_v58 = vld [vmem:[%s2474_s10 + $0x3a4] ss:$16 sps:$4 sm:$0xff]   ;;  %v2035_v59 = vld [vmem:[%s2474_s10 + $0x3ac] ss:$16 sps:$4 sm:$0xff]  }
  0xb3   : > { %1225 = vmatpush1.bf16.msra.mxu0 %v1944_v60  ;;  %1348 = vmatpush1.bf16.msra.mxu1 %v1945_v61  ;;  %v2030_v60 = vld [vmem:[%s2474_s10 + $0x3a0] ss:$16 sps:$4 sm:$0xff]   ;;  %v2033_v61 = vld [vmem:[%s2474_s10 + $0x3a8] ss:$16 sps:$4 sm:$0xff]  }
  0xb4   : > { %1226 = vmatprep.subr.bf16.mxu0 %v1946_v62  ;;  %1349 = vmatprep.subr.bf16.mxu1 %v1948_v63  ;;  %v2038_v62 = vld [vmem:[%s2474_s10 + $0x3c4] ss:$16 sps:$4 sm:$0xff]   ;;  %v2041_v63 = vld [vmem:[%s2474_s10 + $0x3cc] ss:$16 sps:$4 sm:$0xff]  }
  0xb7   : > { %1227 = vmatpush1.bf16.msra.mxu0 %v1950_v0  ;;  %1350 = vmatpush1.bf16.msra.mxu1 %v1951_v1  ;;  %v2036_v0 = vld [vmem:[%s2474_s10 + $0x3c0] ss:$16 sps:$4 sm:$0xff]   ;;  %v2039_v1 = vld [vmem:[%s2474_s10 + $0x3c8] ss:$16 sps:$4 sm:$0xff]  }
  0xb8   : > { %1237 = vmatprep.subr.bf16.mxu0 %v1954_v3  ;;  %1360 = vmatprep.subr.bf16.mxu1 %v1957_v4  ;;  %v2047_v3 = vld [vmem:[%s2474_s10 + $0x3ec] ss:$16 sps:$4 sm:$0xff]   ;;  %v2042_v4 = vld [vmem:[%s2474_s10 + $0x3e0] ss:$16 sps:$4 sm:$0xff]  }
  0xba   : > { %1229 = vmatmul.mubr.bf16.vlgmr.msra.gmra.mrb[0].mxu0 %v268_v5  ;;  %1352 = vmatmul.mubr.bf16.vlgmr.msra.gmra.mrb[0].mxu1 %v268_v5  ;;  %v2045_v5 = vld [vmem:[%s2474_s10 + $0x3e8] ss:$16 sps:$4 sm:$0xff]  }
  0xbb   : > { %1238 = vmatpush1.bf16.msra.mxu0 %v1952_v6  ;;  %1361 = vmatpush1.bf16.msra.mxu1 %v1955_v7  ;;  %v265_v6 = vld [vmem:[#allocation2 + $0x10] sm:$0xff]  ;;  %v2050_v7 = vld [vmem:[%s2474_s10 + $0x404] ss:$16 sps:$4 sm:$0xff]  }
  0xbc   : > { %1239 = vmatprep.subr.bf16.mxu0 %v1960_v8  ;;  %1362 = vmatprep.subr.bf16.mxu1 %v1963_v9  ;;  %v2053_v8 = vld [vmem:[%s2474_s10 + $0x40c] ss:$16 sps:$4 sm:$0xff]   ;;  %v270_v9 = vpack.c.bf16 %v265_v6, %v265_v6 }
  0xbd   : > { %1269 = vmatprep.mubr.bf16.mxu0 %v271_v32  ;;  %1392 = vmatprep.mubr.bf16.mxu1 %v271_v32 }
  0xbf   : > { %1240 = vmatpush1.bf16.msra.mxu0 %v1958_v10  ;;  %1363 = vmatpush1.bf16.msra.mxu1 %v1961_v11  ;;  %v2048_v10 = vld [vmem:[%s2474_s10 + $0x400] ss:$16 sps:$4 sm:$0xff]   ;;  %v2051_v11 = vld [vmem:[%s2474_s10 + $0x408] ss:$16 sps:$4 sm:$0xff]  }
  0xc0   : > { %1241 = vmatprep.subr.bf16.mxu0 %v1966_v12  ;;  %1364 = vmatprep.subr.bf16.mxu1 %v1969_v13  ;;  %v2056_v12 = vld [vmem:[%s2474_s10 + $0x424] ss:$16 sps:$4 sm:$0xff]   ;;  %v2059_v13 = vld [vmem:[%s2474_s10 + $0x42c] ss:$16 sps:$4 sm:$0xff]  }
  0xc3   : > { %1242 = vmatpush1.bf16.msra.mxu0 %v1964_v14  ;;  %1365 = vmatpush1.bf16.msra.mxu1 %v1967_v15  ;;  %v2054_v14 = vld [vmem:[%s2474_s10 + $0x420] ss:$16 sps:$4 sm:$0xff]   ;;  %v2057_v15 = vld [vmem:[%s2474_s10 + $0x428] ss:$16 sps:$4 sm:$0xff]  }
  0xc4   : > { %1243 = vmatprep.subr.bf16.mxu0 %v1972_v16  ;;  %1366 = vmatprep.subr.bf16.mxu1 %v1975_v17  ;;  %v2062_v16 = vld [vmem:[%s2474_s10 + $0x444] ss:$16 sps:$4 sm:$0xff]   ;;  %v2065_v17 = vld [vmem:[%s2474_s10 + $0x44c] ss:$16 sps:$4 sm:$0xff]  }
  0xc7   : > { %1244 = vmatpush1.bf16.msra.mxu0 %v1970_v18  ;;  %1367 = vmatpush1.bf16.msra.mxu1 %v1973_v19  ;;  %v2260_v18 = vmov 0   ;;  %v2060_v19 = vld [vmem:[%s2474_s10 + $0x440] ss:$16 sps:$4 sm:$0xff]  }
  0xc8   : > { %1245 = vmatprep.subr.bf16.mxu0 %v1978_v20  ;;  %1368 = vmatprep.subr.bf16.mxu1 %v1981_v21  ;;  %v2063_v20 = vld [vmem:[%s2474_s10 + $0x448] ss:$16 sps:$4 sm:$0xff]   ;;  %v2068_v21 = vld [vmem:[%s2474_s10 + $0x464] ss:$16 sps:$4 sm:$0xff]  }
  0xcb   : > { %1246 = vmatpush1.bf16.msra.mxu0 %v1976_v22  ;;  %1369 = vmatpush1.bf16.msra.mxu1 %v1979_v23  ;;  %v2071_v22 = vld [vmem:[%s2474_s10 + $0x46c] ss:$16 sps:$4 sm:$0xff]   ;;  %v2066_v23 = vld [vmem:[%s2474_s10 + $0x460] ss:$16 sps:$4 sm:$0xff]  }
  0xcc   : > { %1247 = vmatprep.subr.bf16.mxu0 %v1984_v24  ;;  %1370 = vmatprep.subr.bf16.mxu1 %v1987_v25  ;;  %v2069_v24 = vld [vmem:[%s2474_s10 + $0x468] ss:$16 sps:$4 sm:$0xff]   ;;  %v2072_v25 = vld [vmem:[%s2474_s10 + $0x484] ss:$16 sps:$4 sm:$0x3f]  }
  0xcf   : > { %1248 = vmatpush1.bf16.msra.mxu0 %v1982_v26  ;;  %1371 = vmatpush1.bf16.msra.mxu1 %v1985_v27  ;;  %v2074_v26 = vld [vmem:[%s2474_s10 + $0x48c] ss:$16 sps:$4 sm:$0x3f]   ;;  %v2076_v27 = vld [vmem:[%s2474_s10 + $0x480] ss:$16 sps:$4 sm:$0x3f]  }
  0xd0   : > { %1249 = vmatprep.subr.bf16.mxu0 %v1990_v28  ;;  %1372 = vmatprep.subr.bf16.mxu1 %v1993_v29  ;;  %v2077_v28 = vld [vmem:[%s2474_s10 + $0x488] ss:$16 sps:$4 sm:$0x3f]   ;;  %v1185_v30 = vsel %vm1183_vm0, %v2076_v27, 0 }
  0xd1   : > { %v267_v29 = vld [vmem:[#allocation2 + $0x20] sm:$0xff] }
  0xd2   : > { %v272_v32 = vpack.c.bf16 %v267_v29, %v267_v29 }
  0xd3   : > { %1250 = vmatpush1.bf16.msra.mxu0 %v1988_v31  ;;  %1373 = vmatpush1.bf16.msra.mxu1 %v1991_v33  ;;  %v1191_v31 = vsel %vm1183_vm0, %v2077_v28, 0  ;;  %v423_v33 = vlaneseq }
  0xd4   : > { %1251 = vmatprep.subr.bf16.mxu0 %v1996_v34  ;;  %1374 = vmatprep.subr.bf16.mxu1 %v1999_v35 }
  0xd5   : > { %v424_v34 = vshrl.u32 %v423_v33, 7 }
  0xd7   : > { %1252 = vmatpush1.bf16.msra.mxu0 %v1994_v36  ;;  %1375 = vmatpush1.bf16.msra.mxu1 %v1997_v37  ;;  %v425_v35 = vsub.s32 0, %v424_v34  ;;  %v433_v36 = vsub.s32 2, %v424_v34  ;;  %v421_v37 = vld [vmem:[%s231_s9] sm:$0xf] }
  0xd8   : > { %1253 = vmatprep.subr.bf16.mxu0 %v2002_v38  ;;  %1376 = vmatprep.subr.bf16.mxu1 %v2005_v39  ;;  %v429_v38 = vsub.s32 1, %v424_v34  ;;  %v437_v39 = vsub.s32 3, %v424_v34 }
  0xdb   : > { %1254 = vmatpush1.bf16.msra.mxu0 %v2000_v40  ;;  %1377 = vmatpush1.bf16.msra.mxu1 %v2003_v41  ;;  %v426_v40 = vrot.slane %v421_v37, %v425_v35  ;;  %v434_v41 = vrot.slane %v421_v37, %v433_v36 }
  0xdc   : > { %1255 = vmatprep.subr.bf16.mxu0 %v2008_v42  ;;  %1378 = vmatprep.subr.bf16.mxu1 %v2011_v43  ;;  %v430_v42 = vrot.slane %v421_v37, %v429_v38  ;;  %v438_v43 = vrot.slane %v421_v37, %v437_v39 }
  0xdf   : > { %1256 = vmatpush1.bf16.msra.mxu0 %v2006_v44  ;;  %1379 = vmatpush1.bf16.msra.mxu1 %v2009_v45 }
  0xe0   : > { %1257 = vmatprep.subr.bf16.mxu0 %v2014_v46  ;;  %1380 = vmatprep.subr.bf16.mxu1 %v2017_v47 }
  0xe3   : > { %1258 = vmatpush1.bf16.msra.mxu0 %v2012_v48  ;;  %1381 = vmatpush1.bf16.msra.mxu1 %v2015_v49 }
  0xe4   : > { %1259 = vmatprep.subr.bf16.mxu0 %v2020_v50  ;;  %1382 = vmatprep.subr.bf16.mxu1 %v2023_v51 }
  0xe7   : > { %1260 = vmatpush1.bf16.msra.mxu0 %v2018_v52  ;;  %1383 = vmatpush1.bf16.msra.mxu1 %v2021_v53 }
  0xe8   : > { %1261 = vmatprep.subr.bf16.mxu0 %v2026_v54  ;;  %1384 = vmatprep.subr.bf16.mxu1 %v2029_v55 }
  0xeb   : > { %1262 = vmatpush1.bf16.msra.mxu0 %v2024_v56  ;;  %1385 = vmatpush1.bf16.msra.mxu1 %v2027_v57 }
  0xec   : > { %1263 = vmatprep.subr.bf16.mxu0 %v2032_v58  ;;  %1386 = vmatprep.subr.bf16.mxu1 %v2035_v59 }
  0xef   : > { %1264 = vmatpush1.bf16.msra.mxu0 %v2030_v60  ;;  %1387 = vmatpush1.bf16.msra.mxu1 %v2033_v61 }
  0xf0   : > { %1265 = vmatprep.subr.bf16.mxu0 %v2038_v62  ;;  %1388 = vmatprep.subr.bf16.mxu1 %v2041_v63 }
  0xf3   : > { %1266 = vmatpush1.bf16.msra.mxu0 %v2036_v0  ;;  %1389 = vmatpush1.bf16.msra.mxu1 %v2039_v1 }
  0xf4   : > { %1267 = vmatprep.subr.bf16.mxu0 %v2044_v2  ;;  %1390 = vmatprep.subr.bf16.mxu1 %v2047_v3 }
  0xf7   : > { %1268 = vmatpush1.bf16.msra.mxu0 %v2042_v4  ;;  %1391 = vmatpush1.bf16.msra.mxu1 %v2045_v5 }
  0xf8   : > { %1278 = vmatprep.subr.bf16.mxu0 %v2050_v7  ;;  %1401 = vmatprep.subr.bf16.mxu1 %v2053_v8 }
  0xfa   : > { %1270 = vmatmul.mubr.bf16.vlgmr.msra.gmra.mrb[0].mxu0 %v270_v9  ;;  %1393 = vmatmul.mubr.bf16.vlgmr.msra.gmra.mrb[0].mxu1 %v270_v9 }
  0xfb   : > { %1279 = vmatpush1.bf16.msra.mxu0 %v2048_v10  ;;  %1402 = vmatpush1.bf16.msra.mxu1 %v2051_v11 }
  0xfc   : > { %1280 = vmatprep.subr.bf16.mxu0 %v2056_v12  ;;  %1403 = vmatprep.subr.bf16.mxu1 %v2059_v13 }
  0xfd   : > { %1310 = vmatprep.mubr.bf16.mxu0 %v2260_v18  ;;  %1433 = vmatprep.mubr.bf16.mxu1 %v2260_v18 }
  0xff   : > { %1281 = vmatpush1.bf16.msra.mxu0 %v2054_v14  ;;  %1404 = vmatpush1.bf16.msra.mxu1 %v2057_v15 }
 0x100   : > { %1282 = vmatprep.subr.bf16.mxu0 %v2062_v16  ;;  %1405 = vmatprep.subr.bf16.mxu1 %v2065_v17 }
 0x103   : > { %1283 = vmatpush1.bf16.msra.mxu0 %v2060_v19  ;;  %1406 = vmatpush1.bf16.msra.mxu1 %v2063_v20 }
 0x104   : > { %1284 = vmatprep.subr.bf16.mxu0 %v2068_v21  ;;  %1407 = vmatprep.subr.bf16.mxu1 %v2071_v22 }
 0x107   : > { %1285 = vmatpush1.bf16.msra.mxu0 %v2066_v23  ;;  %1408 = vmatpush1.bf16.msra.mxu1 %v2069_v24 }
 0x108   : > { %1740 = vmatprep.subr.msk.bf16.mxu0 %vm1183_vm0, %v2072_v25  ;;  %1742 = vmatprep.subr.msk.bf16.mxu1 %vm1183_vm0, %v2074_v26 }
 0x10b   : > { %1287 = vmatpush1.bf16.msra.mxu0 %v1185_v30  ;;  %1410 = vmatpush1.bf16.msra.mxu1 %v1191_v31 }
 0x10e   : > { %1741 = vmatmul.mubr.msk.bf16.vlgmr.msra.gmra.mrb[0].mxu0 %vm1179_vm1, %v272_v32  ;;  %1743 = vmatmul.mubr.msk.bf16.vlgmr.msra.gmra.mrb[0].mxu1 %vm1179_vm1, %v272_v32 }
 0x1e1   : > { %v1312_v44 = vpop.f32.mrb[0].mxu0  ;;  %v1435_v45 = vpop.f32.mrb[0].mxu1 }
 0x1e2   : > { %v1752_v46 = vadd.f32 %v1312_v44, %v426_v40  ;;  %v1754_v47 = vadd.f32 %v1435_v45, %v434_v41  ;;  %v1314_v48 = vpop.f32.mrb[1].mxu0  ;;  %v1437_v49 = vpop.f32.mrb[1].mxu1 }
 0x1e3   : > { %v1753_v50 = vadd.f32 %v1314_v48, %v430_v42  ;;  %v1755_v51 = vadd.f32 %v1437_v49, %v438_v43  ;;  %v1316_v52 = vpop.f32.mrb[2].mxu0  ;;  %v1439_v53 = vpop.f32.mrb[2].mxu1 }
 0x1e4   : > { %1442 = vst [vmem:[%s258_s27] sm:$0xff] %v1752_v46  ;;  %1444 = vst [vmem:[%s258_s27 + $0x10] sm:$0xff] %v1754_v47  ;;  %v1317_v54 = vpop.f32.mrb[3].mxu0  ;;  %v1440_v55 = vpop.f32.mrb[3].mxu1 }
 0x1e5   : > { %1443 = vst [vmem:[%s258_s27 + $0x8] sm:$0xff] %v1753_v50  ;;  %1445 = vst [vmem:[%s258_s27 + $0x18] sm:$0xff] %v1755_v51 }
 0x1e6   : > { %2179 = shalt.err (!%p2176_p2)
}
 0x1e7   : > { %s2180_s23 = scalar_lea.hbm %s2634_s8, 512  ;;  %s2184_s6 = scalar_lea.hbm %s2686_s3, 1024 }
 0x1e8   : > { %p2181_p6 = scmp.ne.s32.totalorder %s2634_s8, %s2180_s23  ;;  %p2185_p8 = scmp.lt.u32.totalorder %s2634_s8, %s2686_s3 }
 0x1e9   : > { %p2186_p5 = scmp.lt.u32.totalorder %s2184_s6, %s2180_s23  ;;  %p2188_p10 = scmp.lt.u32.totalorder %s2180_s23, %s2634_s8 }
 0x1ea   : > { %p2182_p12 = pnand %p2181_p6, %p2705_p13 }
 0x1eb   : > { %p2187_p11 = por %p2186_p5, %p2185_p8 }
 0x1ec   : > { %p2183_p9 = pneg %p2182_p12 }
 0x1ed   : > { %p2189_p0 = por %p2188_p10, %p2187_p11 }
 0x1ef   : > { %p2190_p7 = pnand %p2189_p0, %p2183_p9 }
 0x1f1   : > { %2193 = shalt.err (!%p2190_p7)
}
 0x1f2   : > { %1782 = dma.vmem_to_hbm [thread:$0]  (%p2705_p13), %s2636_s19, 512, %s2634_s8, %s1447_s15  }
 0x1f3 PF: > { %s1475_s7 = sand.u32 1, %s2232_s12   ;;  %p2706_p4 = scmp.ne.s32.totalorder %s2697_s4, 0 }
 0x1f4   : > { %p2707_p1 = scmp.ge.s32.totalorder %s2252_s17, 2  ;;  %s1476_s9 = scalar_lea.sflag [#allocation4], %s1475_s7 }
 0x1f6   : > { %p1796_p3 = pnand %p2707_p1, %p2706_p4 }
 0x1f8   : > { %2227 = dma.done.wait (!%p1796_p3), %s1476_s9, 512  }
 0x1f9   : > { %2229 = vsyncadd (!%p1796_p3), %s1476_s9, 4294966784  ;;  %s20_s17 = sadd.s32 1, %s2252_s17   ;;  %s2708_s12 = smov %s2236_s13 }
 0x1fa   : > { %p17_p2 = scmp.ge.s32.totalorder %s20_s17, 4   ;;  %s2709_s13 = smov %s2240_s14 }
 0x1fb   : > { %s2710_s14 = smov %s2330_s24  ;;  %s2711_s15 = smov %s2248_s16 }
 0x1fc   : > { %s2712_s16 = smov %s2714_s18  ;;  %19 = sbr.rel (!%p17_p2) target bundleno = 9 (0x9), region = 94 }
 0x203   :  { %1481 = vsyncpa [#allocation3], 1 }
 0x204   :  { %1483 = vsyncpa [#allocation3 + $0x1], 1 }
 0x205   :  { %1484 = vsyncpa [#allocation6], 1 }
 0x206   :  { %1486 = vsyncpa [#allocation6 + $0x1], 1 }
 0x207   :  { %1487 = vsyncpa [#allocation4], 1 }
 0x208   :  { %1489 = vsyncpa [#allocation4 + $0x1], 1 }

</bundles_post_ra>
